<compile_context>
chip_gen: v5e
topology: v5e:2x2
jax: 0.10.0
libtpu: 0.0.40
codegen_flags: <defaults>
</compile_context>

<pallas_src>
import jax
import jax.numpy as jnp
from jax.experimental import pallas as pl
from jax.experimental.pallas import tpu as pltpu


# --------------------------------------------------------------------------
# Kernels
# --------------------------------------------------------------------------
def _layer_norm_store(y, gamma_ref, beta_ref, o_ref):
    """Residual-added f32 `y` -> LayerNorm(eps=1e-6) -> o_ref."""
    d_in = o_ref.shape[-1]
    inv_d = 1.0 / d_in
    mean = jnp.sum(y, axis=-1, keepdims=True) * inv_d
    c = y - mean
    var = jnp.sum(c * c, axis=-1, keepdims=True) * inv_d
    y_norm = c * jax.lax.rsqrt(var + 1e-6)
    o_ref[...] = (y_norm * gamma_ref[...] + beta_ref[...]).astype(o_ref.dtype)


def ffn_kernel_resident(x_ref, w1_ref, b1_ref, w2_ref, b2_ref, gamma_ref,
                        beta_ref, o_ref):
    """Weight-resident path: whole W1/W2 in VMEM, 1-D row grid, no scratch."""
    x = x_ref[...]
    h = jnp.dot(x.astype(w1_ref.dtype), w1_ref[...],
                preferred_element_type=jnp.float32)
    h = jnp.maximum(h + b1_ref[...], 0.0)
    y = jnp.dot(h.astype(w2_ref.dtype), w2_ref[...],
                preferred_element_type=jnp.float32)
    # dropout = identity (eval); residual in f32.
    y = y + b2_ref[...] + x.astype(jnp.float32)
    _layer_norm_store(y, gamma_ref, beta_ref, o_ref)


def ffn_kernel_streaming(x_ref, w1_ref, b1_ref, w2_ref, b2_ref, gamma_ref,
                         beta_ref, o_ref, acc_ref):
    """Hidden-dim streaming path: accumulate d_hid chunks in f32 VMEM scratch."""
    k = pl.program_id(1)

    h = jnp.dot(x_ref[...].astype(w1_ref.dtype), w1_ref[...],
                preferred_element_type=jnp.float32)
    h = jnp.maximum(h + b1_ref[...], 0.0)
    part = jnp.dot(h.astype(w2_ref.dtype), w2_ref[...],
                   preferred_element_type=jnp.float32)

    # First chunk writes (no zero-init store/reload pass), later chunks add.
    @pl.when(k == 0)
    def _first():
        acc_ref[...] = part

    @pl.when(k > 0)
    def _accumulate():
        acc_ref[...] += part

    @pl.when(k == pl.num_programs(1) - 1)
    def _finalize():
        # dropout = identity (eval); residual in f32.
        y = acc_ref[...] + b2_ref[...] + x_ref[...].astype(jnp.float32)
        _layer_norm_store(y, gamma_ref, beta_ref, o_ref)


# --------------------------------------------------------------------------
# Tiling / generation helpers
# --------------------------------------------------------------------------
def _round_up(a, b):
    return (a + b - 1) // b * b


def _tpu_generation():
    try:
        kind = jax.devices()[0].device_kind.lower()
    except Exception:
        return "unknown"
    if "v7" in kind:
        return "v7x"
    if "v6" in kind:
        return "v6e"
    if "v5e" in kind or "v5 lite" in kind or "v5lite" in kind:
        return "v5e"
    return "other"


# (vmem_cap_bytes, default streaming row tile)
_GEN_CONFIG = {
    "v7x": (48 * 2**20, 768),    # 64 MiB physical -> leave compiler headroom
    "v6e": (100 * 2**20, 1024),  # 128 MiB physical; streaming ridge ~656 flop/B
    "v5e": (100 * 2**20, 512),   # 128 MiB physical; streaming ridge ~240 flop/B
}
_GEN_DEFAULT = (48 * 2**20, 512)


def _choose_row_tile(m, requested, want_two_steps):
    requested = max(8, requested)
    if m <= requested:
        t = m                                   # full extent: always layout-legal
    else:
        t = 0
        # Prefer MXU-friendly 256-aligned tiles that divide M (no host-side pad);
        # only accept divisors >= requested/2 so arithmetic intensity survives.
        for align in (256, 8):
            cand = (requested // align) * align
            while cand >= align and 2 * cand >= requested:
                if m % cand == 0:
                    t = cand
                    break
                cand -= align
            if t:
                break
        if not t:
            t = _round_up(requested, 8)         # ragged tail -> host pad
    if want_two_steps:
        # Only dual-TC chips (v7x) benefit from >=2 steps on the parallel axis.
        while t > 8 and -(-m // t) < 2:
            t = max(8, _round_up(t // 2, 8))
    return t


def _choose_hid_tile(d_hid, requested):
    full = _round_up(d_hid, 128)
    t = min(_round_up(max(requested, 128), 128), full)
    if t >= 256 and t % 256 != 0:
        t = (t // 256) * 256                     # prefer 256-aligned for 256x256 MXU
    return max(128, (t // 128) * 128)


# --------------------------------------------------------------------------
# Wrapper
# --------------------------------------------------------------------------
def positionwise_feed_forward(x, w1, b1, w2, b2, gamma, beta, *,
                              tile_rows=None, tile_hid=512,
                              compute_dtype=jnp.bfloat16,
                              weight_resident=None):
    """x: (B, S, d_in); w1: (d_in, d_hid); w2: (d_hid, d_in). Returns (B, S, d_in)."""
    B, S, d_in = x.shape
    d_hid = w1.shape[1]
    M = B * S
    out_dtype = x.dtype
    cdt = jnp.dtype(compute_dtype)

    x_isz = jnp.dtype(x.dtype).itemsize
    o_isz = jnp.dtype(out_dtype).itemsize
    w_isz = cdt.itemsize

    gen = _tpu_generation()
    vmem_cap, stream_tr_default = _GEN_CONFIG.get(gen, _GEN_DEFAULT)
    budget = int(0.85 * vmem_cap)
    want_two_steps = (gen == "v7x")

    def resident_bytes(tr_):
        return (2 * tr_ * d_in * (x_isz + o_isz)        # x / out double buffers
                + 2 * 2 * d_in * d_hid * w_isz          # W1 + W2 (double buffered)
                + 4 * (2 * d_hid + 6 * d_in)            # biases / LN params
                + tr_ * d_hid * 4 + tr_ * d_in * 4)     # h / y f32 intermediates

    # x stays in its input dtype (f32 residual / LayerNorm precision); only the
    # weights are fed to the MXU in compute_dtype (bf16 by default).
    x2d = x.reshape(M, d_in)
    w1c = w1.astype(cdt)
    w2c = w2.astype(cdt)
    b1_2d = b1.reshape(1, d_hid).astype(jnp.float32)
    b2_2d = b2.reshape(1, d_in).astype(jnp.float32)
    gamma_2d = gamma.reshape(1, d_in).astype(jnp.float32)
    beta_2d = beta.reshape(1, d_in).astype(jnp.float32)

    if weight_resident is None:
        probe_tr = tile_rows if tile_rows is not None else 256
        weight_resident = resident_bytes(probe_tr) <= budget

    if weight_resident:
        tr = _choose_row_tile(M, tile_rows if tile_rows is not None else 256,
                              want_two_steps)
        M_pad = _round_up(M, tr)
        if M_pad != M:
            x2d = jnp.pad(x2d, ((0, M_pad - M), (0, 0)))

        grid = (M_pad // tr,)
        in_specs = [
            pl.BlockSpec((tr, d_in), lambda i: (i, 0)),        # x rows
            pl.BlockSpec((d_in, d_hid), lambda i: (0, 0)),     # W1 (resident)
            pl.BlockSpec((1, d_hid), lambda i: (0, 0)),        # b1
            pl.BlockSpec((d_hid, d_in), lambda i: (0, 0)),     # W2 (resident)
            pl.BlockSpec((1, d_in), lambda i: (0, 0)),         # b2
            pl.BlockSpec((1, d_in), lambda i: (0, 0)),         # gamma
            pl.BlockSpec((1, d_in), lambda i: (0, 0)),         # beta
        ]
        out_spec = pl.BlockSpec((tr, d_in), lambda i: (i, 0))
        scratch = []
        kernel = ffn_kernel_resident
        dims = ("parallel",)
        bytes_est = resident_bytes(tr)
    else:
        tr = _choose_row_tile(
            M, tile_rows if tile_rows is not None else stream_tr_default,
            want_two_steps)
        th = _choose_hid_tile(d_hid, tile_hid)

        def stream_bytes(tr_, th_):
            return (2 * tr_ * d_in * (x_isz + o_isz)
                    + 2 * (d_in * th_ + th_ * d_in) * w_isz
                    + 4 * (2 * th_ + 6 * d_in)
                    + tr_ * d_in * 4                     # acc scratch
                    + tr_ * th_ * 4)                     # h f32 intermediate

        while th > 128 and stream_bytes(tr, th) > budget:
            th = max(128, ((th // 2) // 128) * 128)

        M_pad = _round_up(M, tr)
        d_hid_pad = _round_up(d_hid, th)
        if M_pad != M:
            x2d = jnp.pad(x2d, ((0, M_pad - M), (0, 0)))
        if d_hid_pad != d_hid:
            w1c = jnp.pad(w1c, ((0, 0), (0, d_hid_pad - d_hid)))
            b1_2d = jnp.pad(b1_2d, ((0, 0), (0, d_hid_pad - d_hid)))
            w2c = jnp.pad(w2c, ((0, d_hid_pad - d_hid), (0, 0)))

        grid = (M_pad // tr, d_hid_pad // th)
        in_specs = [
            pl.BlockSpec((tr, d_in), lambda i, k: (i, 0)),     # x rows (const over k)
            pl.BlockSpec((d_in, th), lambda i, k: (0, k)),     # W1 chunk
            pl.BlockSpec((1, th), lambda i, k: (0, k)),        # b1 chunk
            pl.BlockSpec((th, d_in), lambda i, k: (k, 0)),     # W2 chunk
            pl.BlockSpec((1, d_in), lambda i, k: (0, 0)),      # b2
            pl.BlockSpec((1, d_in), lambda i, k: (0, 0)),      # gamma
            pl.BlockSpec((1, d_in), lambda i, k: (0, 0)),      # beta
        ]
        out_spec = pl.BlockSpec((tr, d_in), lambda i, k: (i, 0))
        scratch = [pltpu.VMEM((tr, d_in), jnp.float32)]
        kernel = ffn_kernel_streaming
        dims = ("parallel", "arbitrary")
        bytes_est = stream_bytes(tr, th)

    vmem_limit = int(min(vmem_cap, max(int(1.5 * bytes_est), 32 * 2**20)))

    out2d = pl.pallas_call(
        kernel,
        out_shape=jax.ShapeDtypeStruct((M_pad, d_in), out_dtype),
        grid_spec=pltpu.PrefetchScalarGridSpec(
            num_scalar_prefetch=0,
            grid=grid,
            in_specs=in_specs,
            out_specs=out_spec,
            scratch_shapes=scratch,
        ),
        compiler_params=pltpu.CompilerParams(
            dimension_semantics=dims,
            vmem_limit_bytes=vmem_limit,
        ),
    )(x2d, w1c, b1_2d, w2c, b2_2d, gamma_2d, beta_2d)

    if M_pad != M:
        out2d = out2d[:M]
    return out2d.reshape(B, S, d_in)


# --------------------------------------------------------------------------
# Reference + test
# --------------------------------------------------------------------------
def reference_ffn(x, w1, b1, w2, b2, gamma, beta):
    h = jnp.maximum(x @ w1 + b1, 0.0)
    y = h @ w2 + b2
    y = y + x
    mean = jnp.mean(y, axis=-1, keepdims=True)
    var = jnp.mean((y - mean) ** 2, axis=-1, keepdims=True)
    y = (y - mean) / jnp.sqrt(var + 1e-6)
    return y * gamma + beta


if __name__ == "__main__":
    B, S, d_in, d_hid = 2, 8, 128, 256

    key = jax.random.PRNGKey(0)
    kx, kw1, kb1, kw2, kb2 = jax.random.split(key, 5)

    x = jax.random.normal(kx, (B, S, d_in), dtype=jnp.float32)

    # Deterministic param init (uniform, roughly matching nn.Linear scale).
    lim1 = 1.0 / (d_in ** 0.5)
    lim2 = 1.0 / (d_hid ** 0.5)
    w1 = jax.random.uniform(kw1, (d_in, d_hid), minval=-lim1, maxval=lim1, dtype=jnp.float32)
    b1 = jax.random.uniform(kb1, (d_hid,), minval=-lim1, maxval=lim1, dtype=jnp.float32)
    w2 = jax.random.uniform(kw2, (d_hid, d_in), minval=-lim2, maxval=lim2, dtype=jnp.float32)
    b2 = jax.random.uniform(kb2, (d_in,), minval=-lim2, maxval=lim2, dtype=jnp.float32)
    gamma = jnp.ones((d_in,), dtype=jnp.float32)
    beta = jnp.zeros((d_in,), dtype=jnp.float32)

    ref = reference_ffn(x, w1, b1, w2, b2, gamma, beta)

    # 1) Default path: bf16 MXU feed, weight-resident (weights fit VMEM).
    out_bf16 = positionwise_feed_forward(x, w1, b1, w2, b2, gamma, beta)
    out_bf16 = jax.block_until_ready(out_bf16)
    assert out_bf16.shape == (B, S, d_in)
    assert jnp.allclose(out_bf16, ref, atol=1e-1, rtol=1e-1), "bf16 resident mismatch"

    # 2) f32 compute, weight-resident path, tight tolerance.
    out_f32 = positionwise_feed_forward(x, w1, b1, w2, b2, gamma, beta,
                                        compute_dtype=jnp.float32)
    out_f32 = jax.block_until_ready(out_f32)
    assert jnp.allclose(out_f32, ref, atol=1e-4, rtol=1e-4), "f32 resident mismatch"

    # 3) Forced hidden-dim streaming path (2 hidden grid steps) exercises the
    #    accumulator write/accumulate/finalize structure.
    out_stream = positionwise_feed_forward(x, w1, b1, w2, b2, gamma, beta,
                                           compute_dtype=jnp.float32,
                                           weight_resident=False, tile_hid=128)
    out_stream = jax.block_until_ready(out_stream)
    assert jnp.allclose(out_stream, ref, atol=1e-4, rtol=1e-4), "f32 streaming mismatch"

    print("KERNEL_OK")
</pallas_src>

<mosaic_0001>
module attributes {stable_mosaic.version = 11 : i64} {
  func.func @ffn_kernel_resident(%arg0: i32, %arg1: memref<16x128xf32, #tpu.memory_space<vmem>>, %arg2: memref<128x256xbf16, #tpu.memory_space<vmem>>, %arg3: memref<1x256xf32, #tpu.memory_space<vmem>>, %arg4: memref<256x128xbf16, #tpu.memory_space<vmem>>, %arg5: memref<1x128xf32, #tpu.memory_space<vmem>>, %arg6: memref<1x128xf32, #tpu.memory_space<vmem>>, %arg7: memref<1x128xf32, #tpu.memory_space<vmem>>, %arg8: memref<16x128xf32, #tpu.memory_space<vmem>>) attributes {dimension_semantics = [#tpu.dimension_semantics<parallel>], iteration_bounds = array<i64: 1>, scalar_prefetch = 0 : i64, scratch_operands = 0 : i64, tpu.core_type = #tpu.core_type<tc>, window_params = [{transform_indices = @transform_0, window_bounds = array<i64: 16, 128>}, {pipeline_mode = #tpu.pipeline_mode<synchronous>, transform_indices = @transform_1, window_bounds = array<i64: 128, 256>}, {pipeline_mode = #tpu.pipeline_mode<synchronous>, transform_indices = @transform_2, window_bounds = array<i64: 1, 256>}, {pipeline_mode = #tpu.pipeline_mode<synchronous>, transform_indices = @transform_3, window_bounds = array<i64: 256, 128>}, {pipeline_mode = #tpu.pipeline_mode<synchronous>, transform_indices = @transform_4, window_bounds = array<i64: 1, 128>}, {pipeline_mode = #tpu.pipeline_mode<synchronous>, transform_indices = @transform_5, window_bounds = array<i64: 1, 128>}, {pipeline_mode = #tpu.pipeline_mode<synchronous>, transform_indices = @transform_6, window_bounds = array<i64: 1, 128>}, {transform_indices = @transform_7, window_bounds = array<i64: 16, 128>}]} {
    %c0 = arith.constant 0 : index
    %c0_0 = arith.constant 0 : index
    %0 = vector.load %arg1[%c0, %c0_0] : memref<16x128xf32, #tpu.memory_space<vmem>>, vector<16x128xf32>
    %1 = arith.truncf %0 : vector<16x128xf32> to vector<16x128xbf16>
    %c0_1 = arith.constant 0 : index
    %c0_2 = arith.constant 0 : index
    %2 = vector.load %arg2[%c0_1, %c0_2] : memref<128x256xbf16, #tpu.memory_space<vmem>>, vector<128x256xbf16>
    %cst = arith.constant dense<0.000000e+00> : vector<16x256xf32>
    %3 = tpu.matmul %1, %2, %cst {dimension_numbers = #tpu.dot_dimension_numbers<[1], [0], [0], [1], [0, 0, 1, 1], [], []>} : vector<16x128xbf16>, vector<128x256xbf16>, vector<16x256xf32> -> vector<16x256xf32>
    %c0_3 = arith.constant 0 : index
    %c0_4 = arith.constant 0 : index
    %4 = vector.load %arg3[%c0_3, %c0_4] : memref<1x256xf32, #tpu.memory_space<vmem>>, vector<1x256xf32>
    %5 = vector.broadcast %4 : vector<1x256xf32> to vector<16x256xf32>
    %6 = arith.addf %3, %5 : vector<16x256xf32>
    %cst_5 = arith.constant 0.000000e+00 : f32
    %7 = vector.broadcast %cst_5 : f32 to vector<16x256xf32>
    %8 = arith.maximumf %6, %7 : vector<16x256xf32>
    %9 = arith.truncf %8 : vector<16x256xf32> to vector<16x256xbf16>
    %c0_6 = arith.constant 0 : index
    %c0_7 = arith.constant 0 : index
    %10 = vector.load %arg4[%c0_6, %c0_7] : memref<256x128xbf16, #tpu.memory_space<vmem>>, vector<256x128xbf16>
    %cst_8 = arith.constant dense<0.000000e+00> : vector<16x128xf32>
    %11 = tpu.matmul %9, %10, %cst_8 {dimension_numbers = #tpu.dot_dimension_numbers<[1], [0], [0], [1], [0, 0, 1, 1], [], []>} : vector<16x256xbf16>, vector<256x128xbf16>, vector<16x128xf32> -> vector<16x128xf32>
    %c0_9 = arith.constant 0 : index
    %c0_10 = arith.constant 0 : index
    %12 = vector.load %arg5[%c0_9, %c0_10] : memref<1x128xf32, #tpu.memory_space<vmem>>, vector<1x128xf32>
    %13 = vector.broadcast %12 : vector<1x128xf32> to vector<16x128xf32>
    %14 = arith.addf %11, %13 : vector<16x128xf32>
    %15 = arith.addf %14, %0 : vector<16x128xf32>
    %cst_11 = arith.constant dense<0.000000e+00> : vector<16xf32>
    %16 = vector.multi_reduction <add>, %15, %cst_11 [1] : vector<16x128xf32> to vector<16xf32>
    %17 = vector.shape_cast %16 : vector<16xf32> to vector<16x1xf32>
    %cst_12 = arith.constant 7.812500e-03 : f32
    %18 = vector.broadcast %cst_12 : f32 to vector<16x1xf32>
    %19 = arith.mulf %17, %18 : vector<16x1xf32>
    %20 = vector.broadcast %19 : vector<16x1xf32> to vector<16x128xf32>
    %21 = arith.subf %15, %20 : vector<16x128xf32>
    %22 = arith.mulf %21, %21 : vector<16x128xf32>
    %cst_13 = arith.constant dense<0.000000e+00> : vector<16xf32>
    %23 = vector.multi_reduction <add>, %22, %cst_13 [1] : vector<16x128xf32> to vector<16xf32>
    %24 = vector.shape_cast %23 : vector<16xf32> to vector<16x1xf32>
    %cst_14 = arith.constant 7.812500e-03 : f32
    %25 = vector.broadcast %cst_14 : f32 to vector<16x1xf32>
    %26 = arith.mulf %24, %25 : vector<16x1xf32>
    %cst_15 = arith.constant 9.99999997E-7 : f32
    %27 = vector.broadcast %cst_15 : f32 to vector<16x1xf32>
    %28 = arith.addf %26, %27 : vector<16x1xf32>
    %29 = math.rsqrt %28 : vector<16x1xf32>
    %30 = vector.broadcast %29 : vector<16x1xf32> to vector<16x128xf32>
    %31 = arith.mulf %21, %30 : vector<16x128xf32>
    %c0_16 = arith.constant 0 : index
    %c0_17 = arith.constant 0 : index
    %32 = vector.load %arg6[%c0_16, %c0_17] : memref<1x128xf32, #tpu.memory_space<vmem>>, vector<1x128xf32>
    %33 = vector.broadcast %32 : vector<1x128xf32> to vector<16x128xf32>
    %34 = arith.mulf %31, %33 : vector<16x128xf32>
    %c0_18 = arith.constant 0 : index
    %c0_19 = arith.constant 0 : index
    %35 = vector.load %arg7[%c0_18, %c0_19] : memref<1x128xf32, #tpu.memory_space<vmem>>, vector<1x128xf32>
    %36 = vector.broadcast %35 : vector<1x128xf32> to vector<16x128xf32>
    %37 = arith.addf %34, %36 : vector<16x128xf32>
    %c0_20 = arith.constant 0 : index
    %c0_21 = arith.constant 0 : index
    %38 = vector.load %arg8[%c0_20, %c0_21] : memref<16x128xf32, #tpu.memory_space<vmem>>, vector<16x128xf32>
    tpu.vector_store %arg8[%c0_20, %c0_21], %37 {strides = array<i32>} : memref<16x128xf32, #tpu.memory_space<vmem>>, vector<16x128xf32>,
    return
  }
  func.func @transform_0(%arg0: i32) -> (i32, i32) {
    %c0_i32 = arith.constant 0 : i32
    %c0_i32_0 = arith.constant 0 : i32
    return %arg0, %c0_i32 : i32, i32
  }
  func.func @transform_1(%arg0: i32) -> (i32, i32) {
    %c0_i32 = arith.constant 0 : i32
    %c0_i32_0 = arith.constant 0 : i32
    %c0_i32_1 = arith.constant 0 : i32
    return %c0_i32, %c0_i32_0 : i32, i32
  }
  func.func @transform_2(%arg0: i32) -> (i32, i32) {
    %c0_i32 = arith.constant 0 : i32
    %c0_i32_0 = arith.constant 0 : i32
    %c0_i32_1 = arith.constant 0 : i32
    return %c0_i32, %c0_i32_0 : i32, i32
  }
  func.func @transform_3(%arg0: i32) -> (i32, i32) {
    %c0_i32 = arith.constant 0 : i32
    %c0_i32_0 = arith.constant 0 : i32
    %c0_i32_1 = arith.constant 0 : i32
    return %c0_i32, %c0_i32_0 : i32, i32
  }
  func.func @transform_4(%arg0: i32) -> (i32, i32) {
    %c0_i32 = arith.constant 0 : i32
    %c0_i32_0 = arith.constant 0 : i32
    %c0_i32_1 = arith.constant 0 : i32
    return %c0_i32, %c0_i32_0 : i32, i32
  }
  func.func @transform_5(%arg0: i32) -> (i32, i32) {
    %c0_i32 = arith.constant 0 : i32
    %c0_i32_0 = arith.constant 0 : i32
    %c0_i32_1 = arith.constant 0 : i32
    return %c0_i32, %c0_i32_0 : i32, i32
  }
  func.func @transform_6(%arg0: i32) -> (i32, i32) {
    %c0_i32 = arith.constant 0 : i32
    %c0_i32_0 = arith.constant 0 : i32
    %c0_i32_1 = arith.constant 0 : i32
    return %c0_i32, %c0_i32_0 : i32, i32
  }
  func.func @transform_7(%arg0: i32) -> (i32, i32) {
    %c0_i32 = arith.constant 0 : i32
    %c0_i32_0 = arith.constant 0 : i32
    return %arg0, %c0_i32 : i32, i32
  }
}

</mosaic_0001>

<bundles_post_ra>
// kernel: tpu_custom_call.1
= control target key start
LH: loop header
LB: loop body
LE: loop exit
PB: predicated region body
PF: predicated region fallthrough
CT: control target
= control target key end

     0   :  { %12 = vsyncpa [#allocation3], 0  ;;  %s850_s0 = inlined_call_operand.hbm [shape: f32[16,128], index: 0, kind: input, shape index: {}]   ;;  %s851_s1 = inlined_call_operand.hbm [shape: bf16[128,256], index: 1, kind: input, shape index: {}]   ;;  %s852_s2 = inlined_call_operand.hbm [shape: f32[1,256], index: 2, kind: input, shape index: {}]   ;;  %s853_s3 = inlined_call_operand.hbm [shape: bf16[256,128], index: 3, kind: input, shape index: {}]   ;;  %s854_s4 = inlined_call_operand.vmem [shape: f32[1,128], index: 4, kind: input, shape index: {}]   ;;  %s855_s5 = inlined_call_operand.vmem [shape: f32[1,128], index: 5, kind: input, shape index: {}]   ;;  %s856_s6 = inlined_call_operand.vmem [shape: f32[1,128], index: 6, kind: input, shape index: {}]   ;;  %s857_s7 = inlined_call_operand.hbm [shape: f32[16,128], index: 7, kind: output, shape index: {}]  }
   0x1   :  { %13 = vsyncpa [#allocation6], 0 }
   0x2   :  { %14 = vsyncpa [#allocation9], 0 }
   0x3   :  { %15 = vsyncpa [#allocation4], 0  ;;  %s33_s26 = sshll.u32 %s851_s1, 4  ;;  %s768_s27 = smov [#allocation5]   ;;  %s34_s26 = int_to_ptr.hbm [resolvable:$true] %s33_s26 }
   0x4   :  { %s35_s28 = sshll.u32 %s768_s27, 4  ;;  %s20_s8 = sshll.u32 %s850_s0, 4  ;;  %s36_s28 = int_to_ptr.vmem [resolvable:$true] %s35_s28  ;;  %s21_s8 = int_to_ptr.hbm [resolvable:$true] %s20_s8 }
   0x5   :  { %s769_s9 = smov 128   ;;  %s770_s10 = smov 8  }
   0x6   :  { %41 = dma.hbm_to_vmem [thread:$0]  %s34_s26, 2048, %s36_s28, [#allocation6], %s769_s9, %s769_s9, %s770_s10  }
   0x7   :  { %s771_s11 = smov [#allocation2]   ;;  %s47_s1 = sshll.u32 %s852_s2, 4  ;;  %s48_s1 = int_to_ptr.hbm [resolvable:$true] %s47_s1 }
   0x8   :  { %s22_s12 = sshll.u32 %s771_s11, 4  ;;  %s57_s16 = sshll.u32 %s853_s3, 4  ;;  %s23_s12 = int_to_ptr.vmem [resolvable:$true] %s22_s12  ;;  %s58_s16 = int_to_ptr.hbm [resolvable:$true] %s57_s16 }
   0x9   :  { %28 = dma.hbm_to_vmem [thread:$0]  %s21_s8, 256, %s23_s12, [#allocation3], %s769_s9, %s769_s9, %s770_s10  }
   0xa   :  { %s772_s17 = smov [#allocation7]   ;;  %s773_s19 = smov [#allocation8]  }
   0xb   :  { %s49_s18 = sshll.u32 %s772_s17, 4  ;;  %s59_s20 = sshll.u32 %s773_s19, 4  ;;  %s50_s18 = int_to_ptr.vmem [resolvable:$true] %s49_s18  ;;  %s60_s20 = int_to_ptr.vmem [resolvable:$true] %s59_s20 }
   0xc   :  { %52 = dma.hbm_to_vmem [thread:$0]  %s48_s1, 32, %s50_s18, [#allocation6]  }
   0xd   :  { %s774_s21 = smov 64   ;;  %s775_s2 = smov 4  }
   0xe   :  { %65 = dma.hbm_to_vmem [thread:$0]  %s58_s16, 2048, %s60_s20, [#allocation9], %s774_s21, %s774_s21, %s775_s2  }
   0xf   :  { %760 = dma.done.wait [#allocation3], 256  }
  0x10   :  { %761 = vsyncadd [#allocation3], 4294967040 }
  0x11   :  { %762 = dma.done.wait [#allocation6], 2080  }
  0x12   :  { %763 = vsyncadd [#allocation6], 4294965216 }
  0x13   :  { %764 = dma.done.wait [#allocation9], 2048  }
  0x14   :  { %765 = vsyncadd [#allocation9], 4294965248  ;;  %v522_v0 = vld [vmem:[#allocation5 + $0x70] sm:$0xf]  ;;  %v607_v1 = vld [vmem:[#allocation5 + $0x74] sm:$0xf0] }
  0x15   :  { %v606_v2 = vld [vmem:[#allocation5 + $0x74] sm:$0xf]  ;;  %v523_v3 = vor.u32 %v607_v1, %v522_v0  ;;  %v524_v4 = vld [vmem:[#allocation5 + $0x78] sm:$0xf0]  ;;  %v514_v5 = vld [vmem:[#allocation5 + $0x60] sm:$0xf] }
  0x16   :  { %v605_v6 = vld [vmem:[#allocation5 + $0x64] sm:$0xf0]  ;;  %v527_v7 = vor.u32 %v606_v2, %v524_v4  ;;  %v604_v8 = vld [vmem:[#allocation5 + $0x64] sm:$0xf]  ;;  %v516_v9 = vld [vmem:[#allocation5 + $0x68] sm:$0xf0] }
  0x17   :  { %193 = vmatpush.bf16.msra.mxu0 %v523_v3  ;;  %v515_v10 = vor.u32 %v605_v6, %v514_v5  ;;  %v519_v11 = vor.u32 %v604_v8, %v516_v9  ;;  %v506_v12 = vld [vmem:[#allocation5 + $0x50] sm:$0xf]  ;;  %v603_v13 = vld [vmem:[#allocation5 + $0x54] sm:$0xf0]  ;;  %v602_v14 = vld [vmem:[#allocation5 + $0x54] sm:$0xf] }
  0x18   :  { %207 = vmatpush.bf16.msra.mxu1 %v527_v7  ;;  %v508_v15 = vld [vmem:[#allocation5 + $0x58] sm:$0xf0]  ;;  %v507_v16 = vor.u32 %v603_v13, %v506_v12  ;;  %v498_v18 = vld [vmem:[#allocation5 + $0x40] sm:$0xf]  ;;  %v601_v19 = vld [vmem:[#allocation5 + $0x44] sm:$0xf0] }
  0x19   :  { %v511_v17 = vor.u32 %v602_v14, %v508_v15  ;;  %v600_v20 = vld [vmem:[#allocation5 + $0x44] sm:$0xf]  ;;  %v500_v21 = vld [vmem:[#allocation5 + $0x48] sm:$0xf0]  ;;  %v499_v22 = vor.u32 %v601_v19, %v498_v18  ;;  %v615_v23 = vld [vmem:[#allocation8 + $0x38] sm:$0xff]  ;;  %s776_s26 = smov [#allocation10]  }
  0x1a   :  { %v623_v24 = vld [vmem:[#allocation8 + $0x78] sm:$0xff]  ;;  %v503_v25 = vor.u32 %v600_v20, %v500_v21  ;;  %v490_v26 = vld [vmem:[#allocation5 + $0x30] sm:$0xf]  ;;  %v598_v28 = vld [vmem:[#allocation5 + $0x34] sm:$0xf]  ;;  %359 = vmatpush.bf16.msra.mxu2 %v615_v23  ;;  %s449_s29 = sshll.u32 %s857_s7, 4  ;;  %s450_s29 = int_to_ptr.hbm [resolvable:$true] %s449_s29 }
  0x1b   :  { %194 = vmatpush.bf16.msra.mxu0 %v515_v10  ;;  %v599_v27 = vld [vmem:[#allocation5 + $0x34] sm:$0xf0]  ;;  %v492_v29 = vld [vmem:[#allocation5 + $0x38] sm:$0xf0]  ;;  %373 = vmatpush.bf16.msra.mxu3 %v623_v24  ;;  %v482_v34 = vld [vmem:[#allocation5 + $0x20] sm:$0xf] }
  0x1c   :  { %208 = vmatpush.bf16.msra.mxu1 %v519_v11  ;;  %v614_v30 = vld [vmem:[#allocation8 + $0x30] sm:$0xff]  ;;  %v491_v32 = vor.u32 %v599_v27, %v490_v26  ;;  %v495_v33 = vor.u32 %v598_v28, %v492_v29  ;;  %v597_v35 = vld [vmem:[#allocation5 + $0x24] sm:$0xf0]  ;;  %v596_v36 = vld [vmem:[#allocation5 + $0x24] sm:$0xf] }
  0x1d   :  { %v622_v31 = vld [vmem:[#allocation8 + $0x70] sm:$0xff]  ;;  %v484_v37 = vld [vmem:[#allocation5 + $0x28] sm:$0xf0]  ;;  %v483_v40 = vor.u32 %v597_v35, %v482_v34  ;;  %v476_v45 = vld [vmem:[#allocation5 + $0x18] sm:$0xf0] }
  0x1e   :  { %360 = vmatpush.bf16.msra.mxu2 %v614_v30  ;;  %v613_v38 = vld [vmem:[#allocation8 + $0x28] sm:$0xff]  ;;  %v487_v41 = vor.u32 %v596_v36, %v484_v37  ;;  %v595_v43 = vld [vmem:[#allocation5 + $0x14] sm:$0xf0]  ;;  %v594_v44 = vld [vmem:[#allocation5 + $0x14] sm:$0xf] }
  0x1f   :  { %195 = vmatpush.bf16.msra.mxu0 %v507_v16  ;;  %374 = vmatpush.bf16.msra.mxu3 %v622_v31  ;;  %v621_v39 = vld [vmem:[#allocation8 + $0x68] sm:$0xff]  ;;  %v612_v46 = vld [vmem:[#allocation8 + $0x20] sm:$0xff]  ;;  %v479_v49 = vor.u32 %v594_v44, %v476_v45  ;;  %v89_v56 = vld [vmem:[#allocation2 + $0x8] sm:$0xff] }
  0x20   :  { %209 = vmatpush.bf16.msra.mxu1 %v511_v17  ;;  %v474_v42 = vld [vmem:[#allocation5 + $0x10] sm:$0xf]  ;;  %v620_v47 = vld [vmem:[#allocation8 + $0x60] sm:$0xff]  ;;  %v468_v53 = vld [vmem:[#allocation5 + $0x8] sm:$0xf0] }
  0x21   :  { %v475_v48 = vor.u32 %v595_v43, %v474_v42  ;;  %v466_v50 = vld [vmem:[#allocation5] sm:$0xf]  ;;  %v593_v51 = vld [vmem:[#allocation5 + $0x4] sm:$0xf0]  ;;  %v592_v52 = vld [vmem:[#allocation5 + $0x4] sm:$0xf] }
  0x22   :  { %361 = vmatpush.bf16.msra.mxu2 %v613_v38  ;;  %v467_v54 = vor.u32 %v593_v51, %v466_v50  ;;  %v88_v55 = vld [vmem:[#allocation2] sm:$0xff]  ;;  %v471_v57 = vor.u32 %v592_v52, %v468_v53  ;;  %v611_v59 = vld [vmem:[#allocation8 + $0x18] sm:$0xff]  ;;  %v608_v1 = vld [vmem:[#allocation8] sm:$0xff] }
  0x23   :  { %196 = vmatpush.bf16.msra.mxu0 %v499_v22  ;;  %375 = vmatpush.bf16.msra.mxu3 %v621_v39  ;;  %v90_v58 = vpack.c.bf16 %v89_v56, %v88_v55  ;;  %v619_v60 = vld [vmem:[#allocation8 + $0x58] sm:$0xff]  ;;  %v610_v61 = vld [vmem:[#allocation8 + $0x10] sm:$0xff]  ;;  %v609_v63 = vld [vmem:[#allocation8 + $0x8] sm:$0xff] }
  0x24   :  { %210 = vmatpush.bf16.msra.mxu1 %v503_v25  ;;  %v618_v62 = vld [vmem:[#allocation8 + $0x50] sm:$0xff]  ;;  %v617_v0 = vld [vmem:[#allocation8 + $0x48] sm:$0xff]  ;;  %v616_v2 = vld [vmem:[#allocation8 + $0x40] sm:$0xff] }
  0x25   :  { %v107_v3 = vld [vmem:[#allocation7] sm:$0x3]  ;;  %v633_v20 = vld [vmem:[%s854_s4] ss:$0 sm:$0xff] }
  0x26   :  { %362 = vmatpush.bf16.msra.mxu2 %v612_v46  ;;  %v109_v6 = vperm.slane %v107_v3, 0  ;;  %v110_v7 = vperm.slane %v107_v3, 1  ;;  %v634_v53 = vld [vmem:[%s855_s5] ss:$0 sm:$0xff]  ;;  %s447_s5 = sshll.u32 %s776_s26, 4  ;;  %s448_s5 = int_to_ptr.vmem [resolvable:$true] %s447_s5 }
  0x27   :  { %197 = vmatpush.bf16.msra.mxu0 %v491_v32  ;;  %376 = vmatpush.bf16.msra.mxu3 %v620_v47 }
  0x28   :  { %211 = vmatpush.bf16.msra.mxu1 %v495_v33 }
  0x2a   :  { %363 = vmatpush.bf16.msra.mxu2 %v611_v59 }
  0x2b   :  { %198 = vmatpush.bf16.msra.mxu0 %v483_v40  ;;  %377 = vmatpush.bf16.msra.mxu3 %v619_v60 }
  0x2c   :  { %212 = vmatpush.bf16.msra.mxu1 %v487_v41 }
  0x2e   :  { %364 = vmatpush.bf16.msra.mxu2 %v610_v61 }
  0x2f   :  { %199 = vmatpush.bf16.msra.mxu0 %v475_v48  ;;  %378 = vmatpush.bf16.msra.mxu3 %v618_v62 }
  0x30   :  { %213 = vmatpush.bf16.msra.mxu1 %v479_v49 }
  0x32   :  { %365 = vmatpush.bf16.msra.mxu2 %v609_v63 }
  0x33   :  { %200 = vmatpush.bf16.msra.mxu0 %v467_v54  ;;  %379 = vmatpush.bf16.msra.mxu3 %v617_v0 }
  0x34   :  { %214 = vmatpush.bf16.msra.mxu1 %v471_v57  ;;  %v635_v57 = vld [vmem:[%s856_s6] ss:$0 sm:$0xff] }
  0x36   :  { %201 = vmatmul.bf16.vlgmr.msra.gmra.mxu0 %v90_v58  ;;  %366 = vmatpush.bf16.msra.mxu2 %v608_v1 }
  0x37   :  { %215 = vmatmul.bf16.vlgmr.msra.gmra.mxu1 %v90_v58  ;;  %380 = vmatpush.bf16.msra.mxu3 %v616_v2 }
  0xb3   :  { %v202_v4 = vpop.f32.mrf.mxu0 }
  0xb4   :  { %v216_v5 = vpop.f32.mrf.mxu1  ;;  %v203_v8 = vadd.f32 %v202_v4, %v109_v6 }
  0xb5   :  { %v217_v9 = vadd.f32 %v216_v5, %v110_v7 }
  0xb6   :  { %v221_v14 = vmax.f32 %v203_v8, 0.0 }
  0xb7   :  { %v222_v16 = vmax.f32 %v217_v9, 0.0 }
  0xbb   :  { %v204_v10 = vpop.f32.mrf.mxu0 }
  0xbc   :  { %v205_v11 = vadd.f32 %v204_v10, %v109_v6  ;;  %v218_v12 = vpop.f32.mrf.mxu1 }
  0xbd   :  { %v219_v13 = vadd.f32 %v218_v12, %v110_v7 }
  0xbe   :  { %v223_v15 = vmax.f32 %v205_v11, 0.0 }
  0xbf   :  { %v224_v17 = vmax.f32 %v219_v13, 0.0 }
  0xc0   :  { %v225_v18 = vpack.c.bf16 %v223_v15, %v221_v14 }
  0xc1   :  { %v226_v19 = vpack.c.bf16 %v224_v17, %v222_v16 }
  0xc2   :  { %367 = vmatmul.bf16.vlgmr.msra.gmra.mxu2 %v225_v18 }
  0xc3   :  { %381 = vmatmul.bf16.vlgmr.msra.gmra.mxu3 %v226_v19 }
 0x145   :  { %v368_v21 = vpop.f32.mrf.mxu2 }
 0x146   :  { %v369_v22 = vadd.f32 %v633_v20, %v368_v21  ;;  %v382_v23 = vpop.f32.mrf.mxu3 }
 0x148   :  { %v383_v24 = vadd.f32 %v382_v23, %v369_v22 }
 0x14a   :  { %v387_v25 = vadd.f32 %v383_v24, %v88_v55 }
 0x14c   :  { %389 = vadd.xlane.f32.xlu0 %v387_v25 }
 0x14d   :  { %v370_v26 = vpop.f32.mrf.mxu2 }
 0x14e   :  { %v371_v27 = vadd.f32 %v633_v20, %v370_v26  ;;  %v384_v28 = vpop.f32.mrf.mxu3 }
 0x150   :  { %v385_v29 = vadd.f32 %v384_v28, %v371_v27 }
 0x152   :  { %v388_v30 = vadd.f32 %v385_v29, %v89_v56 }
 0x154   :  { %391 = vadd.xlane.f32.xlu0 %v388_v30 }
 0x1bf   :  { %v390_v31 = vpop.xlane.xlu0 %389 }
 0x1c0   :  { %v393_v32 = vmul.f32 0.0078125, %v390_v31 }
 0x1c2   :  { %v395_v33 = vsub.f32 %v387_v25, %v393_v32 }
 0x1c4   :  { %v397_v34 = vmul.f32 %v395_v33, %v395_v33 }
 0x1c6   :  { %399 = vadd.xlane.f32.xlu1 %v397_v34 }
 0x1c7   :  { %v392_v35 = vpop.xlane.xlu0 %391 }
 0x1c8   :  { %v394_v36 = vmul.f32 0.0078125, %v392_v35 }
 0x1ca   :  { %v396_v37 = vsub.f32 %v388_v30, %v394_v36 }
 0x1cc   :  { %v398_v38 = vmul.f32 %v396_v37, %v396_v37 }
 0x1ce   :  { %401 = vadd.xlane.f32.xlu1 %v398_v38 }
 0x239   :  { %v400_v39 = vpop.xlane.xlu1 %399 }
 0x23a   :  { %v403_v40 = vmul.f32 0.0078125, %v400_v39 }
 0x23c   :  { %v405_v41 = vadd.f32 1e-06, %v403_v40 }
 0x23e   :  { %636 = vrsqrt.f32 %v405_v41  ;;  %vm413_vm1 = vweird.f32 %v405_v41 }
 0x241   :  { %v402_v42 = vpop.xlane.xlu1 %401 }
 0x242   :  { %v404_v43 = vmul.f32 0.0078125, %v402_v42 }
 0x244   :  { %v637_v44 = vpop.eup %636  ;;  %v406_v45 = vadd.f32 1e-06, %v404_v43 }
 0x245   :  { %v408_v46 = vmul.f32 %v637_v44, %v405_v41  ;;  %vm414_vm0 = vweird.f32 %v637_v44 }
 0x246   :  { %638 = vrsqrt.f32 %v406_v45  ;;  %vm415_vm2 = vmor %vm413_vm1, %vm414_vm0  ;;  %vm423_vm4 = vweird.f32 %v406_v45 }
 0x247   :  { %v409_v47 = vmul.f32 %v637_v44, %v408_v46 }
 0x249   :  { %v410_v48 = vmul.f32 0.5, %v409_v47 }
 0x24b   :  { %v411_v49 = vsub.f32 1.5, %v410_v48 }
 0x24c   :  { %v639_v50 = vpop.eup %638 }
 0x24d   :  { %v412_v51 = vmul.f32 %v637_v44, %v411_v49  ;;  %v418_v52 = vmul.f32 %v639_v50, %v406_v45  ;;  %vm424_vm3 = vweird.f32 %v639_v50 }
 0x24e   :  { %vm425_vm5 = vmor %vm423_vm4, %vm424_vm3 }
 0x24f   :  { %v416_v54 = vsel %vm415_vm2, %v637_v44, %v412_v51  ;;  %v419_v55 = vmul.f32 %v639_v50, %v418_v52 }
 0x250   :  { %v427_v56 = vmul.f32 %v416_v54, %v395_v33 }
 0x251   :  { %v420_v58 = vmul.f32 0.5, %v419_v55 }
 0x252   :  { %v433_v59 = vmul.f32 %v634_v53, %v427_v56 }
 0x253   :  { %v421_v60 = vsub.f32 1.5, %v420_v58 }
 0x254   :  { %v439_v61 = vadd.f32 %v635_v57, %v433_v59 }
 0x255   :  { %v422_v62 = vmul.f32 %v639_v50, %v421_v60 }
 0x256   :  { %441 = vst [vmem:[#allocation10] sm:$0xff] %v439_v61 }
 0x257   :  { %v426_v63 = vsel %vm425_vm5, %v639_v50, %v422_v62 }
 0x258   :  { %v428_v0 = vmul.f32 %v426_v63, %v396_v37 }
 0x25a   :  { %v434_v1 = vmul.f32 %v634_v53, %v428_v0 }
 0x25c   :  { %v440_v2 = vadd.f32 %v635_v57, %v434_v1 }
 0x25e   :  { %442 = vst [vmem:[#allocation10 + $0x8] sm:$0xff] %v440_v2 }
 0x25f   :  { %455 = dma.vmem_to_hbm [thread:$0]  %s448_s5, 256, %s450_s29, [#allocation4], %s769_s9, %s769_s9, %s770_s10  }
 0x260   :  { %766 = dma.done.wait [#allocation4], 256  }
 0x261   :  { %767 = vsyncadd [#allocation4], 4294967040 }
 0x262   :  { %460 = vsyncpa [#allocation3], 1 }
 0x263   :  { %461 = vsyncpa [#allocation6], 1 }
 0x264   :  { %462 = vsyncpa [#allocation9], 1 }
 0x265   :  { %463 = vsyncpa [#allocation4], 1 }

</bundles_post_ra>
